<compile_context>
chip_gen: v5e
topology: v5e:2x2
jax: 0.10.0
libtpu: 0.0.40
codegen_flags: <defaults>
</compile_context>

<pallas_src>
import functools
import math

import jax
import jax.numpy as jnp
from jax import lax
from jax.experimental import pallas as pl
from jax.experimental.pallas import tpu as pltpu

_EPS = 1e-5                    # torch.nn.LayerNorm default
_LANE = 128
_SUBLANE = 8
_MAX_ROWS_PER_TILE = 512       # ~85% of HBM roofline; 1024 on v6e buys ~1% only
_TARGET_TILES = 8              # keep the grid long enough to pipeline / split TCs
_TILE_VMEM_BUDGET = 24 * 1024 * 1024   # blocks + temporaries budget (bytes)
_VMEM_LIMIT_BYTES = 32 * 1024 * 1024   # scoped VMEM limit (safe on v5e/v6e/v7x)


def _round_up(x, m):
    return ((x + m - 1) // m) * m


def _choose_row_tile(rows, d, itemsize):
    """Pick the row-tile size TR for a (rows, d) LayerNorm.

    Constraints:
      * double-buffered in+out blocks plus ~3 f32 full-tile temporaries stay
        under _TILE_VMEM_BUDGET (VMEM lane-pads d to a multiple of 128),
      * the grid has >= _TARGET_TILES steps when the workload is big enough
        (pipelining overlap + megacore split on v7x),
      * TR is a multiple of 8, or equals `rows` for a single full block.
    """
    d_lanes = _round_up(d, _LANE)
    # 2 (in+out) x 2 (double buffer) x itemsize  +  ~3 f32 kernel temporaries
    bytes_per_row = d_lanes * (4 * itemsize + 3 * 4)
    tr_vmem = max(_SUBLANE, (_TILE_VMEM_BUDGET // bytes_per_row) // _SUBLANE * _SUBLANE)
    tr_tiles = _round_up(max(1, rows // _TARGET_TILES), _SUBLANE)
    tr = max(_SUBLANE, min(_MAX_ROWS_PER_TILE, tr_vmem, tr_tiles))
    if tr >= rows:
        # Single block covering all rows; block row dim equal to the full array
        # dim is allowed even when it is not a multiple of 8.
        return rows
    return tr


def _layernorm_kernel(x_ref, gamma_ref, beta_ref, o_ref, *, eps, inv_d, affine):
    """LayerNorm over the last axis of one (TR, D) row tile.

    x_ref     : (TR, D) input rows
    gamma_ref : (1, D) f32 scale row (unused if affine=False)
    beta_ref  : (1, D) f32 shift row (unused if affine=False)
    o_ref     : (TR, D) output rows
    """
    x = x_ref[...].astype(jnp.float32)
    mean = jnp.sum(x, axis=-1, keepdims=True) * inv_d
    centered = x - mean
    # Two-pass (centered) variance for torch-equivalent numerics.
    var = jnp.sum(centered * centered, axis=-1, keepdims=True) * inv_d
    y = centered * lax.rsqrt(var + eps)
    if affine:
        y = y * gamma_ref[...] + beta_ref[...]
    o_ref[...] = y.astype(o_ref.dtype)


def layernorm_pallas(x, gamma, beta, *, eps=_EPS, affine=True):
    """LayerNorm over the last dim of an (..., D) array. Shapes preserved."""
    orig_shape = x.shape
    d = orig_shape[-1]
    rows = int(math.prod(orig_shape[:-1])) if len(orig_shape) > 1 else 1
    x2 = x.reshape(rows, d)                      # free (contiguous) reshape
    gamma2 = gamma.astype(jnp.float32).reshape(1, d)
    beta2 = beta.astype(jnp.float32).reshape(1, d)

    tr = _choose_row_tile(rows, d, x.dtype.itemsize)
    n_tiles = pl.cdiv(rows, tr)                  # ragged last tile handled by Pallas

    out = pl.pallas_call(
        functools.partial(_layernorm_kernel, eps=float(eps),
                          inv_d=1.0 / float(d), affine=affine),
        out_shape=jax.ShapeDtypeStruct((rows, d), x.dtype),
        grid_spec=pl.GridSpec(
            grid=(n_tiles,),
            in_specs=[
                pl.BlockSpec((tr, d), lambda i: (i, 0)),
                pl.BlockSpec((1, d), lambda i: (0, 0)),
                pl.BlockSpec((1, d), lambda i: (0, 0)),
            ],
            out_specs=pl.BlockSpec((tr, d), lambda i: (i, 0)),
        ),
        compiler_params=pltpu.CompilerParams(
            dimension_semantics=("parallel",),
            vmem_limit_bytes=_VMEM_LIMIT_BYTES,
        ),
    )(x2, gamma2, beta2)
    return out.reshape(orig_shape)


class LayerNormalizingBlockPallas:
    """Pallas re-implementation of mhnfs LayerNormalizingBlock.

    Holds three independent LayerNorm parameter sets (query / support actives /
    support inactives); each normalization runs on the free (B*S, D) view of
    its tensor with no extra HBM copies.
    """

    def __init__(self, association_space_dim: int, usage: bool = True,
                 affine: bool = True):
        self.usage = usage
        self.affine = affine
        self.dim = association_space_dim
        # torch.nn.LayerNorm default init (weight=1, bias=0).
        ones = jnp.ones((association_space_dim,), dtype=jnp.float32)
        zeros = jnp.zeros((association_space_dim,), dtype=jnp.float32)
        self.gamma_query, self.beta_query = ones, zeros
        self.gamma_act, self.beta_act = ones, zeros
        self.gamma_inact, self.beta_inact = ones, zeros

    def __call__(self, query_embedding, support_actives_embedding,
                 support_inactives_embedding):
        if not self.usage:
            return (query_embedding, support_actives_embedding,
                    support_inactives_embedding)
        q = layernorm_pallas(query_embedding, self.gamma_query, self.beta_query,
                             affine=self.affine)
        a = layernorm_pallas(support_actives_embedding, self.gamma_act,
                             self.beta_act, affine=self.affine)
        if support_inactives_embedding is not None:
            i = layernorm_pallas(support_inactives_embedding, self.gamma_inact,
                                 self.beta_inact, affine=self.affine)
        else:
            i = None
        return (q, a, i)


def _layernorm_ref(x, gamma, beta, eps=_EPS):
    mean = jnp.mean(x, axis=-1, keepdims=True)
    var = jnp.mean((x - mean) ** 2, axis=-1, keepdims=True)
    return (x - mean) / jnp.sqrt(var + eps) * gamma + beta


def _run_check(batch, n_act, n_inact, hidden):
    key = jax.random.PRNGKey(0)
    k_q, k_a, k_i, k_g, k_b = jax.random.split(key, 5)

    query = jax.random.normal(k_q, (batch, 1, hidden), dtype=jnp.float32)
    sup_act = jax.random.normal(k_a, (batch, n_act, hidden), dtype=jnp.float32)
    sup_inact = jax.random.normal(k_i, (batch, n_inact, hidden), dtype=jnp.float32)

    block = LayerNormalizingBlockPallas(hidden, usage=True, affine=True)
    # Distinct non-trivial affine params per LayerNorm so the per-tensor
    # gamma/beta selection is actually exercised.
    gs = 1.0 + 0.1 * jax.random.normal(k_g, (3, hidden), dtype=jnp.float32)
    bs = 0.1 * jax.random.normal(k_b, (3, hidden), dtype=jnp.float32)
    block.gamma_query, block.beta_query = gs[0], bs[0]
    block.gamma_act, block.beta_act = gs[1], bs[1]
    block.gamma_inact, block.beta_inact = gs[2], bs[2]

    out_q, out_a, out_i = block(query, sup_act, sup_inact)
    jax.block_until_ready((out_q, out_a, out_i))

    ref_q = _layernorm_ref(query, block.gamma_query, block.beta_query)
    ref_a = _layernorm_ref(sup_act, block.gamma_act, block.beta_act)
    ref_i = _layernorm_ref(sup_inact, block.gamma_inact, block.beta_inact)
    assert out_q.shape == (batch, 1, hidden)
    assert out_a.shape == (batch, n_act, hidden)
    assert out_i.shape == (batch, n_inact, hidden)
    assert jnp.allclose(out_q, ref_q, atol=1e-5, rtol=1e-5)
    assert jnp.allclose(out_a, ref_a, atol=1e-5, rtol=1e-5)
    assert jnp.allclose(out_i, ref_i, atol=1e-5, rtol=1e-5)


if __name__ == "__main__":
    # Narrow-D path (D=32 < 128 lanes; no wrapper lane padding, HBM stays dense).
    _run_check(batch=2, n_act=4, n_inact=6, hidden=32)
    # Multi-tile / ragged-last-tile path (rows not a multiple of the row tile).
    _run_check(batch=4, n_act=9, n_inact=11, hidden=256)
    print("KERNEL_OK")
</pallas_src>

<mosaic_0001>
module attributes {stable_mosaic.version = 11 : i64} {
  func.func @_layernorm_kernel(%arg0: i32, %arg1: memref<2x32xf32, #tpu.memory_space<vmem>>, %arg2: memref<1x32xf32, #tpu.memory_space<vmem>>, %arg3: memref<1x32xf32, #tpu.memory_space<vmem>>, %arg4: memref<2x32xf32, #tpu.memory_space<vmem>>) attributes {dimension_semantics = [#tpu.dimension_semantics<parallel>], iteration_bounds = array<i64: 1>, scalar_prefetch = 0 : i64, scratch_operands = 0 : i64, tpu.core_type = #tpu.core_type<tc>, window_params = [{transform_indices = @transform_0, window_bounds = array<i64: 2, 32>}, {pipeline_mode = #tpu.pipeline_mode<synchronous>, transform_indices = @transform_1, window_bounds = array<i64: 1, 32>}, {pipeline_mode = #tpu.pipeline_mode<synchronous>, transform_indices = @transform_2, window_bounds = array<i64: 1, 32>}, {transform_indices = @transform_3, window_bounds = array<i64: 2, 32>}]} {
    %c0 = arith.constant 0 : index
    %c0_0 = arith.constant 0 : index
    %0 = vector.load %arg1[%c0, %c0_0] : memref<2x32xf32, #tpu.memory_space<vmem>>, vector<2x32xf32>
    %cst = arith.constant dense<0.000000e+00> : vector<2xf32>
    %1 = vector.multi_reduction <add>, %0, %cst [1] : vector<2x32xf32> to vector<2xf32>
    %2 = vector.shape_cast %1 : vector<2xf32> to vector<2x1xf32>
    %cst_1 = arith.constant 3.125000e-02 : f32
    %3 = vector.broadcast %cst_1 : f32 to vector<2x1xf32>
    %4 = arith.mulf %2, %3 : vector<2x1xf32>
    %5 = vector.broadcast %4 : vector<2x1xf32> to vector<2x32xf32>
    %6 = arith.subf %0, %5 : vector<2x32xf32>
    %7 = arith.mulf %6, %6 : vector<2x32xf32>
    %cst_2 = arith.constant dense<0.000000e+00> : vector<2xf32>
    %8 = vector.multi_reduction <add>, %7, %cst_2 [1] : vector<2x32xf32> to vector<2xf32>
    %9 = vector.shape_cast %8 : vector<2xf32> to vector<2x1xf32>
    %cst_3 = arith.constant 3.125000e-02 : f32
    %10 = vector.broadcast %cst_3 : f32 to vector<2x1xf32>
    %11 = arith.mulf %9, %10 : vector<2x1xf32>
    %cst_4 = arith.constant 9.99999974E-6 : f32
    %12 = vector.broadcast %cst_4 : f32 to vector<2x1xf32>
    %13 = arith.addf %11, %12 : vector<2x1xf32>
    %14 = math.rsqrt %13 : vector<2x1xf32>
    %15 = vector.broadcast %14 : vector<2x1xf32> to vector<2x32xf32>
    %16 = arith.mulf %6, %15 : vector<2x32xf32>
    %c0_5 = arith.constant 0 : index
    %c0_6 = arith.constant 0 : index
    %17 = vector.load %arg2[%c0_5, %c0_6] : memref<1x32xf32, #tpu.memory_space<vmem>>, vector<1x32xf32>
    %18 = vector.broadcast %17 : vector<1x32xf32> to vector<2x32xf32>
    %19 = arith.mulf %16, %18 : vector<2x32xf32>
    %c0_7 = arith.constant 0 : index
    %c0_8 = arith.constant 0 : index
    %20 = vector.load %arg3[%c0_7, %c0_8] : memref<1x32xf32, #tpu.memory_space<vmem>>, vector<1x32xf32>
    %21 = vector.broadcast %20 : vector<1x32xf32> to vector<2x32xf32>
    %22 = arith.addf %19, %21 : vector<2x32xf32>
    %c0_9 = arith.constant 0 : index
    %c0_10 = arith.constant 0 : index
    %23 = vector.load %arg4[%c0_9, %c0_10] : memref<2x32xf32, #tpu.memory_space<vmem>>, vector<2x32xf32>
    tpu.vector_store %arg4[%c0_9, %c0_10], %22 {strides = array<i32>} : memref<2x32xf32, #tpu.memory_space<vmem>>, vector<2x32xf32>,
    return
  }
  func.func @transform_0(%arg0: i32) -> (i32, i32) {
    %c0_i32 = arith.constant 0 : i32
    %c0_i32_0 = arith.constant 0 : i32
    return %arg0, %c0_i32 : i32, i32
  }
  func.func @transform_1(%arg0: i32) -> (i32, i32) {
    %c0_i32 = arith.constant 0 : i32
    %c0_i32_0 = arith.constant 0 : i32
    %c0_i32_1 = arith.constant 0 : i32
    return %c0_i32, %c0_i32_0 : i32, i32
  }
  func.func @transform_2(%arg0: i32) -> (i32, i32) {
    %c0_i32 = arith.constant 0 : i32
    %c0_i32_0 = arith.constant 0 : i32
    %c0_i32_1 = arith.constant 0 : i32
    return %c0_i32, %c0_i32_0 : i32, i32
  }
  func.func @transform_3(%arg0: i32) -> (i32, i32) {
    %c0_i32 = arith.constant 0 : i32
    %c0_i32_0 = arith.constant 0 : i32
    return %arg0, %c0_i32 : i32, i32
  }
}

</mosaic_0001>

<bundles_post_ra>
// kernel: tpu_custom_call.1
= control target key start
LH: loop header
LB: loop body
LE: loop exit
PB: predicated region body
PF: predicated region fallthrough
CT: control target
= control target key end

     0   :  { %8 = vsyncpa [#allocation3], 0  ;;  %s219_s0 = inlined_call_operand.hbm [shape: f32[2,32], index: 0, kind: input, shape index: {}]   ;;  %s220_s1 = inlined_call_operand.hbm [shape: f32[1,32], index: 1, kind: input, shape index: {}]   ;;  %s221_s2 = inlined_call_operand.vmem [shape: f32[1,32], index: 2, kind: input, shape index: {}]   ;;  %s222_s3 = inlined_call_operand.hbm [shape: f32[2,32], index: 3, kind: output, shape index: {}]  }
   0x1   :  { %9 = vsyncpa [#allocation6], 0 }
   0x2   :  { %10 = vsyncpa [#allocation4], 0  ;;  %s16_s14 = sshll.u32 %s219_s0, 4  ;;  %s181_s15 = smov [#allocation2]   ;;  %s17_s14 = int_to_ptr.hbm [resolvable:$true] %s16_s14 }
   0x3   :  { %s18_s16 = sshll.u32 %s181_s15, 4  ;;  %s27_s19 = sshll.u32 %s220_s1, 4  ;;  %s19_s16 = int_to_ptr.vmem [resolvable:$true] %s18_s16  ;;  %s28_s19 = int_to_ptr.hbm [resolvable:$true] %s27_s19 }
   0x4   :  { %21 = dma.hbm_to_vmem [thread:$0]  %s17_s14, 32, %s19_s16, [#allocation3]  }
   0x5   :  { %s182_s20 = smov [#allocation5]  }
   0x6   :  { %s29_s21 = sshll.u32 %s182_s20, 4  ;;  %s30_s21 = int_to_ptr.vmem [resolvable:$true] %s29_s21 }
   0x7   :  { %32 = dma.hbm_to_vmem [thread:$0]  %s28_s19, 16, %s30_s21, [#allocation6]  }
   0x8   :  { %175 = dma.done.wait [#allocation3], 32  }
   0x9   :  { %176 = vsyncadd [#allocation3], 4294967264 }
   0xa   :  { %177 = dma.done.wait [#allocation6], 16  }
   0xb   :  { %178 = vsyncadd [#allocation6], 4294967280  ;;  %vm44_vm0 = vcmask 254976   ;;  %v43_v0 = vld [vmem:[#allocation2] sm:$0x3]  ;;  %s183_s22 = smov [#allocation7]  }
   0xc   :  { %v45_v1 = vsel %vm44_vm0, %v43_v0, 0.0  ;;  %v99_v16 = vld [vmem:[#allocation5] ss:$0 sm:$0xff]  ;;  %v100_v19 = vld [vmem:[%s221_s2] ss:$0 sm:$0xff]  ;;  %s83_s23 = sshll.u32 %s183_s22, 4  ;;  %s84_s23 = int_to_ptr.vmem [resolvable:$true] %s83_s23 }
   0xd   :  { %46 = vadd.xlane.f32.xlu0 %v45_v1  ;;  %s85_s26 = sshll.u32 %s222_s3, 4  ;;  %s86_s26 = int_to_ptr.hbm [resolvable:$true] %s85_s26 }
  0x80   :  { %v47_v2 = vpop.xlane.xlu0 %46 }
  0x81   :  { %v48_v3 = vmul.f32 0.03125, %v47_v2 }
  0x83   :  { %v49_v4 = vsub.f32 %v43_v0, %v48_v3 }
  0x85   :  { %v50_v5 = vmul.f32 %v49_v4, %v49_v4 }
  0x87   :  { %v51_v6 = vsel %vm44_vm0, %v50_v5, 0.0 }
  0x88   :  { %52 = vadd.xlane.f32.xlu0 %v51_v6 }
  0xfb   :  { %v53_v7 = vpop.xlane.xlu0 %52 }
  0xfc   :  { %v54_v8 = vmul.f32 0.03125, %v53_v7 }
  0xfe   :  { %v55_v9 = vadd.f32 1e-05, %v54_v8 }
 0x100   :  { %101 = vrsqrt.f32 %v55_v9  ;;  %vm62_vm2 = vweird.f32 %v55_v9 }
 0x106   :  { %v102_v10 = vpop.eup %101 }
 0x107   :  { %v57_v11 = vmul.f32 %v102_v10, %v55_v9  ;;  %vm63_vm1 = vweird.f32 %v102_v10 }
 0x108   :  { %vm64_vm3 = vmor %vm62_vm2, %vm63_vm1 }
 0x109   :  { %v58_v12 = vmul.f32 %v102_v10, %v57_v11 }
 0x10b   :  { %v59_v13 = vmul.f32 0.5, %v58_v12 }
 0x10d   :  { %v60_v14 = vsub.f32 1.5, %v59_v13 }
 0x10f   :  { %v61_v15 = vmul.f32 %v102_v10, %v60_v14 }
 0x111   :  { %v65_v17 = vsel %vm64_vm3, %v102_v10, %v61_v15 }
 0x112   :  { %v66_v18 = vmul.f32 %v65_v17, %v49_v4 }
 0x114   :  { %v71_v20 = vmul.f32 %v99_v16, %v66_v18 }
 0x116   :  { %v76_v21 = vadd.f32 %v100_v19, %v71_v20 }
 0x118   :  { %77 = vst.msk [vmem:[#allocation7] sm:$0x3] %vm44_vm0, %v76_v21 }
 0x119   :  { %88 = dma.vmem_to_hbm [thread:$0]  %s84_s23, 32, %s86_s26, [#allocation4]  }
 0x11a   :  { %179 = dma.done.wait [#allocation4], 32  }
 0x11b   :  { %180 = vsyncadd [#allocation4], 4294967264 }
 0x11c   :  { %93 = vsyncpa [#allocation3], 1 }
 0x11d   :  { %94 = vsyncpa [#allocation6], 1 }
 0x11e   :  { %95 = vsyncpa [#allocation4], 1 }

</bundles_post_ra>
